<compile_context>
chip_gen: v6e
topology: v6e:2x2x1
jax: 0.10.0
libtpu: 0.0.40
codegen_flags: <defaults>
</compile_context>

<pallas_src>
import jax
import jax.numpy as jnp
import numpy as np
from jax import lax
from jax.experimental import pallas as pl
from jax.experimental.pallas import tpu as pltpu

VOCAB = 256
HIDDEN = 128
OUT = 128
SUBLANE = 8
BLOCK_B = 256   # batch tile, only used when B is large (v7x two-TC sharding)


# -----------------------------------------------------------------------------
# In-kernel helpers
# -----------------------------------------------------------------------------
def _counts_from_ids(ids, vocab):
    """counts[b, v] = #{s : ids[b, s] == v}, float32 (B, V).

    Only the (B, V) accumulator is live — no (B, S, V) one-hot.  The column
    extraction ids[:, s] is done with a mask + lane reduce (XLU slot) instead
    of a dynamic lane slice, so it lowers on every TPU generation.
    """
    B, S = ids.shape
    # Hoisted out of the loop (JAX does not CSE broadcast_in_dim).
    s_iota = lax.broadcasted_iota(jnp.int32, (B, S), 1)
    v_iota = lax.broadcasted_iota(jnp.int32, (B, vocab), 1)

    def body(s, counts):
        id_s = jnp.sum(jnp.where(s_iota == s, ids, 0), axis=1, keepdims=True)  # (B, 1)
        return counts + (id_s == v_iota).astype(jnp.float32)                    # (B, V)

    return lax.fori_loop(0, S, body, jnp.zeros((B, vocab), jnp.float32),
                         unroll=(S <= 32))


# -----------------------------------------------------------------------------
# Kernel A (fused full_forward): embedding lookup + mean pool + linear + tanh.
#   counts  = one-hot counts over the vocab          (VPU, (B,V) live only)
#   pooled  = (counts @ table) / S                   (bf16 MXU, f32 acc)
#   out     = tanh(pooled @ W + b)                   (bf16 MXU, f32 epilogue)
# -----------------------------------------------------------------------------
def _fused_kernel(ids_ref, table_ref, w_ref, b_ref, pooled_ref, out_ref):
    ids = ids_ref[...]                                               # (B, S) int32
    S = ids.shape[1]
    counts = _counts_from_ids(ids, table_ref.shape[0])               # (B, V) f32
    pooled = jnp.dot(counts.astype(jnp.bfloat16), table_ref[...],
                     preferred_element_type=jnp.float32) * (1.0 / S)  # (B, H) f32
    pooled_ref[...] = pooled
    h = jnp.dot(pooled.astype(jnp.bfloat16), w_ref[...],
                preferred_element_type=jnp.float32)                   # (B, O) f32
    out_ref[...] = jnp.tanh(h + b_ref[...])                           # f32 EUP tanh


# Kernel B: pooled-only (calculate_only_pretrained path).
def _embed_pool_kernel(ids_ref, table_ref, pooled_ref):
    ids = ids_ref[...]
    S = ids.shape[1]
    counts = _counts_from_ids(ids, table_ref.shape[0])
    pooled_ref[...] = jnp.dot(counts.astype(jnp.bfloat16), table_ref[...],
                              preferred_element_type=jnp.float32) * (1.0 / S)


# Kernel C: head-only (use_pretrained_output=True path).
def _head_kernel(pooled_ref, w_ref, b_ref, out_ref):
    h = jnp.dot(pooled_ref[...].astype(jnp.bfloat16), w_ref[...],
                preferred_element_type=jnp.float32)
    out_ref[...] = jnp.tanh(h + b_ref[...])


# -----------------------------------------------------------------------------
# Wrappers
# -----------------------------------------------------------------------------
def _pad_batch(x):
    """Pad leading (batch/sublane) dim up to a multiple of 8 for unmasked stores."""
    b = x.shape[0]
    pad = (-b) % SUBLANE
    if pad:
        x = jnp.pad(x, ((0, pad),) + ((0, 0),) * (x.ndim - 1))
    return x, b


def _vmem_spec():
    return pl.BlockSpec(memory_space=pltpu.MemorySpace.VMEM)


def fused_embed_pool_head(table, w, b, ids):
    """Single fused kernel: returns (pooled (B,H) f32, out (B,O) f32)."""
    ids = ids.astype(jnp.int32)
    ids_p, B = _pad_batch(ids)
    Bp, S = ids_p.shape
    V, H = table.shape
    O = w.shape[1]
    b2 = b.reshape(1, O).astype(jnp.float32)

    out_shape = (jax.ShapeDtypeStruct((Bp, H), jnp.float32),
                 jax.ShapeDtypeStruct((Bp, O), jnp.float32))

    if Bp % BLOCK_B == 0 and Bp // BLOCK_B >= 2:
        # Large batch: block B so the "parallel" grid axis shards across the
        # two v7x TensorCores; table/W stay whole-array resident (bf16, tiny).
        pooled, out = pl.pallas_call(
            _fused_kernel,
            out_shape=out_shape,
            grid_spec=pltpu.PrefetchScalarGridSpec(
                num_scalar_prefetch=0, grid=(Bp // BLOCK_B,),
                in_specs=[
                    pl.BlockSpec((BLOCK_B, S), lambda i: (i, 0)),
                    pl.BlockSpec((V, H), lambda i: (0, 0)),
                    pl.BlockSpec((H, O), lambda i: (0, 0)),
                    pl.BlockSpec((1, O), lambda i: (0, 0)),
                ],
                out_specs=[
                    pl.BlockSpec((BLOCK_B, H), lambda i: (i, 0)),
                    pl.BlockSpec((BLOCK_B, O), lambda i: (i, 0)),
                ],
            ),
            compiler_params=pltpu.CompilerParams(
                dimension_semantics=("parallel",)),
        )(ids_p, table, w, b2)
    else:
        # Small batch: gridless, everything VMEM-resident, one kernel launch.
        pooled, out = pl.pallas_call(
            _fused_kernel,
            out_shape=out_shape,
            in_specs=[_vmem_spec()] * 4,
            out_specs=(_vmem_spec(), _vmem_spec()),
        )(ids_p, table, w, b2)

    return pooled[:B], out[:B]


def embed_and_pool(table, ids):
    """Pooled embedding only (calculate_only_pretrained path)."""
    ids = ids.astype(jnp.int32)
    ids_p, B = _pad_batch(ids)
    Bp, _ = ids_p.shape
    V, H = table.shape
    pooled = pl.pallas_call(
        _embed_pool_kernel,
        out_shape=jax.ShapeDtypeStruct((Bp, H), jnp.float32),
        in_specs=[_vmem_spec(), _vmem_spec()],
        out_specs=_vmem_spec(),
    )(ids_p, table)
    return pooled[:B]


def head_forward(pooled, w, b):
    """Head only (use_pretrained_output=True path)."""
    pooled_p, B = _pad_batch(pooled.astype(jnp.float32))
    O = w.shape[1]
    out = pl.pallas_call(
        _head_kernel,
        out_shape=jax.ShapeDtypeStruct((pooled_p.shape[0], O), jnp.float32),
        in_specs=[_vmem_spec()] * 3,
        out_specs=_vmem_spec(),
    )(pooled_p, w, b.reshape(1, O).astype(jnp.float32))
    return out[:B]


# -----------------------------------------------------------------------------
# Base-class semantics (pure Python glue, mirrors the PyTorch module exactly).
# -----------------------------------------------------------------------------
class PretrainedEmbeddingsModel:
    def __init__(self, PTE_keys, use_pretrained_output):
        assert isinstance(PTE_keys, (list, tuple)) and all(
            isinstance(x, str) for x in PTE_keys
        ), "PTE_keys must be a sequence of strings"
        self.PTE_keys = list(PTE_keys)
        self.use_pretrained_output = use_pretrained_output
        self.calculate_only_pretrained = False
        # TODO(synk): PyTorch train()/eval() mode toggling inside
        # pretrained_embedding has no effect here (no dropout/batchnorm in this
        # synthetic instantiation), so it is omitted.

    def full_forward(self, *args):
        pretrained_out = self.pretrained_embedding(*args)
        return self.forward_with_PTE(*self.PTE_tensors_from_dict(pretrained_out))

    def forward(self, *args, **kwargs):
        if self.calculate_only_pretrained:
            return self.pretrained_embedding(*args, **kwargs)
        if self.use_pretrained_output:
            return self.forward_with_PTE(*args, **kwargs)
        else:
            return self.full_forward(*args, **kwargs)

    def pretrained_embedding(self, *args, key_prefix=''):
        if not hasattr(self, 'PTE_keys'):
            raise AttributeError(
                'You need to initialize the PretrainedEmbeddingsModel before '
                'calling pretrained_embedding')
        PTE = self.get_PTE(*args)
        if not hasattr(PTE, 'keys'):
            raise TypeError(f'the return value of get_PTE must be a dict, got {type(PTE)}')
        if set(PTE.keys()) != set(self.PTE_keys):
            raise ValueError('Keys returned by get_PTE must match PTE_keys')
        return {key_prefix + k: v for k, v in PTE.items()}

    def PTE_tensors_from_dict(self, PTE_dict, key_prefix=''):
        if not hasattr(PTE_dict, 'keys'):
            raise TypeError(f'PTE_dict must be a dict, got {type(PTE_dict)}')
        effective_PTE_keys = [key_prefix + x for x in self.PTE_keys]
        if set(PTE_dict.keys()) != set(effective_PTE_keys):
            raise ValueError('Keys in PTE_dict must match key_prefix + PTE_keys')
        return [PTE_dict[key_prefix + key] for key in self.PTE_keys]

    def get_PTE(self, *args):
        raise NotImplementedError

    def forward_with_PTE(self, *PTE_input_tensors):
        raise NotImplementedError


class PooledTokenEmbeddingModel(PretrainedEmbeddingsModel):
    """Concrete instantiation: frozen token-embedding + mean-pool ("pretrained"
    sentence embedding), then a trainable linear+tanh head.

    On the full_forward path the two stages are computed by ONE fused Pallas
    kernel; the PTE dict contract is kept by caching the fused head output for
    the pooled tensor it came from.
    """

    def __init__(self, use_pretrained_output=False, *, seed=0):
        super().__init__(PTE_keys=["pooled_embeddings"],
                         use_pretrained_output=use_pretrained_output)
        k_tab, k_w, k_b = jax.random.split(jax.random.PRNGKey(seed), 3)
        # bf16 storage: halves VMEM/HBM traffic, hits the native MXU path.
        self.table = (jax.random.normal(k_tab, (VOCAB, HIDDEN), jnp.float32)
                      * 0.02).astype(jnp.bfloat16)
        self.w = (jax.random.normal(k_w, (HIDDEN, OUT), jnp.float32)
                  * (HIDDEN ** -0.5)).astype(jnp.bfloat16)
        self.b = jax.random.normal(k_b, (OUT,), jnp.float32) * 0.01
        self._fused_cache = None

    def get_PTE(self, token_ids):
        if self.calculate_only_pretrained:
            pooled = embed_and_pool(self.table, token_ids)
            return {"pooled_embeddings": pooled}
        # full_forward path: run the fused kernel once, cache the head output.
        pooled, out = fused_embed_pool_head(self.table, self.w, self.b, token_ids)
        self._fused_cache = (pooled, out)
        return {"pooled_embeddings": pooled}

    def forward_with_PTE(self, pooled_embeddings):
        cache = self._fused_cache
        if cache is not None and cache[0] is pooled_embeddings:
            # Same pooled tensor produced by the fused kernel in get_PTE:
            # the head result is already computed — no second kernel launch.
            self._fused_cache = None
            return cache[1]
        return head_forward(pooled_embeddings, self.w, self.b)


if __name__ == "__main__":
    B, S = 2, 8
    key = jax.random.PRNGKey(0)
    ids = jax.random.randint(key, (B, S), 0, VOCAB, dtype=jnp.int32)

    model = PooledTokenEmbeddingModel(use_pretrained_output=False)

    # Path 1: full forward (one fused kernel: embed + mean-pool + linear + tanh).
    out = jax.block_until_ready(model.forward(ids))

    # Path 2: calculate_only_pretrained -> pooled-only kernel.
    model.calculate_only_pretrained = True
    pooled = jax.block_until_ready(model.forward(ids)["pooled_embeddings"])
    model.calculate_only_pretrained = False

    # Path 3: use_pretrained_output -> standalone head kernel on the pooled PTE.
    model.use_pretrained_output = True
    out_head = jax.block_until_ready(model.forward(pooled))
    model.use_pretrained_output = False

    # float64 reference built from the (bf16-valued) parameters:
    #   tanh(mean_s(table[ids]) @ W + b)
    table_np = np.asarray(model.table.astype(jnp.float32), dtype=np.float64)
    w_np = np.asarray(model.w.astype(jnp.float32), dtype=np.float64)
    b_np = np.asarray(model.b, dtype=np.float64)
    ids_np = np.asarray(ids)
    pooled_ref = table_np[ids_np].mean(axis=1)                  # (B, H)
    out_ref = np.tanh(pooled_ref @ w_np + b_np)                 # (B, O)

    assert out.shape == (B, OUT)
    assert pooled.shape == (B, HIDDEN)
    assert np.allclose(np.asarray(pooled, dtype=np.float64), pooled_ref,
                       atol=1e-4, rtol=1e-3)
    # bf16 matmul inputs (f32 accumulate) -> slightly looser tolerance here.
    assert np.allclose(np.asarray(out, dtype=np.float64), out_ref,
                       atol=2e-3, rtol=2e-2)
    # Standalone head kernel matches the fused head output.
    assert np.allclose(np.asarray(out_head), np.asarray(out), atol=1e-5, rtol=1e-5)

    print("KERNEL_OK")
</pallas_src>

<mosaic_0001>
module attributes {stable_mosaic.version = 11 : i64} {
  func.func @_fused_kernel(%arg0: memref<8x8xi32, #tpu.memory_space<vmem>>, %arg1: memref<256x128xbf16, #tpu.memory_space<vmem>>, %arg2: memref<128x128xbf16, #tpu.memory_space<vmem>>, %arg3: memref<1x128xf32, #tpu.memory_space<vmem>>, %arg4: memref<8x128xf32, #tpu.memory_space<vmem>>, %arg5: memref<8x128xf32, #tpu.memory_space<vmem>>) attributes {dimension_semantics = [], scalar_prefetch = 0 : i64, scratch_operands = 0 : i64, tpu.core_type = #tpu.core_type<tc>} {
    %c0 = arith.constant 0 : index
    %c0_0 = arith.constant 0 : index
    %0 = vector.load %arg0[%c0, %c0_0] : memref<8x8xi32, #tpu.memory_space<vmem>>, vector<8x8xi32>
    %1 = tpu.iota {dimensions = array<i32: 1>} : vector<8x8xi32>
    %2 = tpu.iota {dimensions = array<i32: 1>} : vector<8x256xi32>
    %cst = arith.constant 0.000000e+00 : f32
    %3 = vector.broadcast %cst : f32 to vector<8x256xf32>
    %c0_i32 = arith.constant 0 : i32
    %4 = vector.broadcast %c0_i32 : i32 to vector<8x8xi32>
    %5 = arith.cmpi eq, %1, %4 : vector<8x8xi32>
    %c0_i32_1 = arith.constant 0 : i32
    %6 = vector.broadcast %c0_i32_1 : i32 to vector<8x8xi32>
    %7 = arith.select %5, %0, %6 : vector<8x8xi1>, vector<8x8xi32>
    %cst_2 = arith.constant dense<0> : vector<8xi32>
    %8 = vector.multi_reduction <add>, %7, %cst_2 [1] : vector<8x8xi32> to vector<8xi32>
    %9 = vector.shape_cast %8 : vector<8xi32> to vector<8x1xi32>
    %10 = vector.broadcast %9 : vector<8x1xi32> to vector<8x256xi32>
    %11 = arith.cmpi eq, %10, %2 : vector<8x256xi32>
    %12 = arith.extui %11 : vector<8x256xi1> to vector<8x256xi32>
    %13 = arith.sitofp %12 : vector<8x256xi32> to vector<8x256xf32>
    %14 = arith.addf %3, %13 : vector<8x256xf32>
    %c1_i32 = arith.constant 1 : i32
    %15 = vector.broadcast %c1_i32 : i32 to vector<8x8xi32>
    %16 = arith.cmpi eq, %1, %15 : vector<8x8xi32>
    %c0_i32_3 = arith.constant 0 : i32
    %17 = vector.broadcast %c0_i32_3 : i32 to vector<8x8xi32>
    %18 = arith.select %16, %0, %17 : vector<8x8xi1>, vector<8x8xi32>
    %cst_4 = arith.constant dense<0> : vector<8xi32>
    %19 = vector.multi_reduction <add>, %18, %cst_4 [1] : vector<8x8xi32> to vector<8xi32>
    %20 = vector.shape_cast %19 : vector<8xi32> to vector<8x1xi32>
    %21 = vector.broadcast %20 : vector<8x1xi32> to vector<8x256xi32>
    %22 = arith.cmpi eq, %21, %2 : vector<8x256xi32>
    %23 = arith.extui %22 : vector<8x256xi1> to vector<8x256xi32>
    %24 = arith.sitofp %23 : vector<8x256xi32> to vector<8x256xf32>
    %25 = arith.addf %14, %24 : vector<8x256xf32>
    %c2_i32 = arith.constant 2 : i32
    %26 = vector.broadcast %c2_i32 : i32 to vector<8x8xi32>
    %27 = arith.cmpi eq, %1, %26 : vector<8x8xi32>
    %c0_i32_5 = arith.constant 0 : i32
    %28 = vector.broadcast %c0_i32_5 : i32 to vector<8x8xi32>
    %29 = arith.select %27, %0, %28 : vector<8x8xi1>, vector<8x8xi32>
    %cst_6 = arith.constant dense<0> : vector<8xi32>
    %30 = vector.multi_reduction <add>, %29, %cst_6 [1] : vector<8x8xi32> to vector<8xi32>
    %31 = vector.shape_cast %30 : vector<8xi32> to vector<8x1xi32>
    %32 = vector.broadcast %31 : vector<8x1xi32> to vector<8x256xi32>
    %33 = arith.cmpi eq, %32, %2 : vector<8x256xi32>
    %34 = arith.extui %33 : vector<8x256xi1> to vector<8x256xi32>
    %35 = arith.sitofp %34 : vector<8x256xi32> to vector<8x256xf32>
    %36 = arith.addf %25, %35 : vector<8x256xf32>
    %c3_i32 = arith.constant 3 : i32
    %37 = vector.broadcast %c3_i32 : i32 to vector<8x8xi32>
    %38 = arith.cmpi eq, %1, %37 : vector<8x8xi32>
    %c0_i32_7 = arith.constant 0 : i32
    %39 = vector.broadcast %c0_i32_7 : i32 to vector<8x8xi32>
    %40 = arith.select %38, %0, %39 : vector<8x8xi1>, vector<8x8xi32>
    %cst_8 = arith.constant dense<0> : vector<8xi32>
    %41 = vector.multi_reduction <add>, %40, %cst_8 [1] : vector<8x8xi32> to vector<8xi32>
    %42 = vector.shape_cast %41 : vector<8xi32> to vector<8x1xi32>
    %43 = vector.broadcast %42 : vector<8x1xi32> to vector<8x256xi32>
    %44 = arith.cmpi eq, %43, %2 : vector<8x256xi32>
    %45 = arith.extui %44 : vector<8x256xi1> to vector<8x256xi32>
    %46 = arith.sitofp %45 : vector<8x256xi32> to vector<8x256xf32>
    %47 = arith.addf %36, %46 : vector<8x256xf32>
    %c4_i32 = arith.constant 4 : i32
    %48 = vector.broadcast %c4_i32 : i32 to vector<8x8xi32>
    %49 = arith.cmpi eq, %1, %48 : vector<8x8xi32>
    %c0_i32_9 = arith.constant 0 : i32
    %50 = vector.broadcast %c0_i32_9 : i32 to vector<8x8xi32>
    %51 = arith.select %49, %0, %50 : vector<8x8xi1>, vector<8x8xi32>
    %cst_10 = arith.constant dense<0> : vector<8xi32>
    %52 = vector.multi_reduction <add>, %51, %cst_10 [1] : vector<8x8xi32> to vector<8xi32>
    %53 = vector.shape_cast %52 : vector<8xi32> to vector<8x1xi32>
    %54 = vector.broadcast %53 : vector<8x1xi32> to vector<8x256xi32>
    %55 = arith.cmpi eq, %54, %2 : vector<8x256xi32>
    %56 = arith.extui %55 : vector<8x256xi1> to vector<8x256xi32>
    %57 = arith.sitofp %56 : vector<8x256xi32> to vector<8x256xf32>
    %58 = arith.addf %47, %57 : vector<8x256xf32>
    %c5_i32 = arith.constant 5 : i32
    %59 = vector.broadcast %c5_i32 : i32 to vector<8x8xi32>
    %60 = arith.cmpi eq, %1, %59 : vector<8x8xi32>
    %c0_i32_11 = arith.constant 0 : i32
    %61 = vector.broadcast %c0_i32_11 : i32 to vector<8x8xi32>
    %62 = arith.select %60, %0, %61 : vector<8x8xi1>, vector<8x8xi32>
    %cst_12 = arith.constant dense<0> : vector<8xi32>
    %63 = vector.multi_reduction <add>, %62, %cst_12 [1] : vector<8x8xi32> to vector<8xi32>
    %64 = vector.shape_cast %63 : vector<8xi32> to vector<8x1xi32>
    %65 = vector.broadcast %64 : vector<8x1xi32> to vector<8x256xi32>
    %66 = arith.cmpi eq, %65, %2 : vector<8x256xi32>
    %67 = arith.extui %66 : vector<8x256xi1> to vector<8x256xi32>
    %68 = arith.sitofp %67 : vector<8x256xi32> to vector<8x256xf32>
    %69 = arith.addf %58, %68 : vector<8x256xf32>
    %c6_i32 = arith.constant 6 : i32
    %70 = vector.broadcast %c6_i32 : i32 to vector<8x8xi32>
    %71 = arith.cmpi eq, %1, %70 : vector<8x8xi32>
    %c0_i32_13 = arith.constant 0 : i32
    %72 = vector.broadcast %c0_i32_13 : i32 to vector<8x8xi32>
    %73 = arith.select %71, %0, %72 : vector<8x8xi1>, vector<8x8xi32>
    %cst_14 = arith.constant dense<0> : vector<8xi32>
    %74 = vector.multi_reduction <add>, %73, %cst_14 [1] : vector<8x8xi32> to vector<8xi32>
    %75 = vector.shape_cast %74 : vector<8xi32> to vector<8x1xi32>
    %76 = vector.broadcast %75 : vector<8x1xi32> to vector<8x256xi32>
    %77 = arith.cmpi eq, %76, %2 : vector<8x256xi32>
    %78 = arith.extui %77 : vector<8x256xi1> to vector<8x256xi32>
    %79 = arith.sitofp %78 : vector<8x256xi32> to vector<8x256xf32>
    %80 = arith.addf %69, %79 : vector<8x256xf32>
    %c7_i32 = arith.constant 7 : i32
    %81 = vector.broadcast %c7_i32 : i32 to vector<8x8xi32>
    %82 = arith.cmpi eq, %1, %81 : vector<8x8xi32>
    %c0_i32_15 = arith.constant 0 : i32
    %83 = vector.broadcast %c0_i32_15 : i32 to vector<8x8xi32>
    %84 = arith.select %82, %0, %83 : vector<8x8xi1>, vector<8x8xi32>
    %cst_16 = arith.constant dense<0> : vector<8xi32>
    %85 = vector.multi_reduction <add>, %84, %cst_16 [1] : vector<8x8xi32> to vector<8xi32>
    %86 = vector.shape_cast %85 : vector<8xi32> to vector<8x1xi32>
    %87 = vector.broadcast %86 : vector<8x1xi32> to vector<8x256xi32>
    %88 = arith.cmpi eq, %87, %2 : vector<8x256xi32>
    %89 = arith.extui %88 : vector<8x256xi1> to vector<8x256xi32>
    %90 = arith.sitofp %89 : vector<8x256xi32> to vector<8x256xf32>
    %91 = arith.addf %80, %90 : vector<8x256xf32>
    %c8_i32 = arith.constant 8 : i32
    %92 = arith.truncf %91 : vector<8x256xf32> to vector<8x256xbf16>
    %c0_17 = arith.constant 0 : index
    %c0_18 = arith.constant 0 : index
    %93 = vector.load %arg1[%c0_17, %c0_18] : memref<256x128xbf16, #tpu.memory_space<vmem>>, vector<256x128xbf16>
    %cst_19 = arith.constant dense<0.000000e+00> : vector<8x128xf32>
    %94 = tpu.matmul %92, %93, %cst_19 {dimension_numbers = #tpu.dot_dimension_numbers<[1], [0], [0], [1], [0, 0, 1, 1], [], []>} : vector<8x256xbf16>, vector<256x128xbf16>, vector<8x128xf32> -> vector<8x128xf32>
    %cst_20 = arith.constant 1.250000e-01 : f32
    %95 = vector.broadcast %cst_20 : f32 to vector<8x128xf32>
    %96 = arith.mulf %94, %95 : vector<8x128xf32>
    %c0_21 = arith.constant 0 : index
    %c0_22 = arith.constant 0 : index
    %97 = vector.load %arg4[%c0_21, %c0_22] : memref<8x128xf32, #tpu.memory_space<vmem>>, vector<8x128xf32>
    tpu.vector_store %arg4[%c0_21, %c0_22], %96 {strides = array<i32>} : memref<8x128xf32, #tpu.memory_space<vmem>>, vector<8x128xf32>,
    %98 = arith.truncf %96 : vector<8x128xf32> to vector<8x128xbf16>
    %c0_23 = arith.constant 0 : index
    %c0_24 = arith.constant 0 : index
    %99 = vector.load %arg2[%c0_23, %c0_24] : memref<128x128xbf16, #tpu.memory_space<vmem>>, vector<128x128xbf16>
    %cst_25 = arith.constant dense<0.000000e+00> : vector<8x128xf32>
    %100 = tpu.matmul %98, %99, %cst_25 {dimension_numbers = #tpu.dot_dimension_numbers<[1], [0], [0], [1], [0, 0, 1, 1], [], []>} : vector<8x128xbf16>, vector<128x128xbf16>, vector<8x128xf32> -> vector<8x128xf32>
    %c0_26 = arith.constant 0 : index
    %c0_27 = arith.constant 0 : index
    %101 = vector.load %arg3[%c0_26, %c0_27] : memref<1x128xf32, #tpu.memory_space<vmem>>, vector<1x128xf32>
    %102 = vector.broadcast %101 : vector<1x128xf32> to vector<8x128xf32>
    %103 = arith.addf %100, %102 : vector<8x128xf32>
    %104 = math.tanh %103 : vector<8x128xf32>
    %c0_28 = arith.constant 0 : index
    %c0_29 = arith.constant 0 : index
    %105 = vector.load %arg5[%c0_28, %c0_29] : memref<8x128xf32, #tpu.memory_space<vmem>>, vector<8x128xf32>
    tpu.vector_store %arg5[%c0_28, %c0_29], %104 {strides = array<i32>} : memref<8x128xf32, #tpu.memory_space<vmem>>, vector<8x128xf32>,
    return
  }
}

</mosaic_0001>

<bundles_post_ra>
// kernel: tpu_custom_call.1
= control target key start
LH: loop header
LB: loop body
LE: loop exit
PB: predicated region body
PF: predicated region fallthrough
CT: control target
= control target key end

     0   :  { %11 = vsyncpa [#allocation3], 0  ;;  %s926_s0 = inlined_call_operand.hbm [shape: s32[8,8], index: 0, kind: input, shape index: {}]   ;;  %s927_s1 = inlined_call_operand.hbm [shape: bf16[256,128], index: 1, kind: input, shape index: {}]   ;;  %s928_s2 = inlined_call_operand.hbm [shape: bf16[128,128], index: 2, kind: input, shape index: {}]   ;;  %s929_s3 = inlined_call_operand.vmem [shape: f32[1,128], index: 3, kind: input, shape index: {}]   ;;  %s930_s4 = inlined_call_operand.hbm [shape: f32[8,128], index: 4, kind: output, shape index: {0}]   ;;  %s931_s5 = inlined_call_operand.hbm [shape: f32[8,128], index: 5, kind: output, shape index: {1}]  }
   0x1   :  { %12 = vsyncpa [#allocation6], 0 }
   0x2   :  { %13 = vsyncpa [#allocation4], 0 }
   0x3   :  { %14 = vsyncpa [#allocation10], 0  ;;  %s801_s18 = smov [#allocation5]  }
   0x4   :  { %s30_s19 = sshll.u32 %s801_s18, 4  ;;  %s31_s19 = int_to_ptr.vmem [resolvable:$true] %s30_s19 }
   0x5   :  { %s701_s20 = scalar_lea.vmem %s31_s19, 2048  ;;  %p706_p1 = scmp.lt.s32.totalorder %s31_s19, %s31_s19 }
   0x6   :  { %p702_p0 = scmp.ne.s32.totalorder %s31_s19, %s701_s20  ;;  %p707_p2 = scmp.lt.s32.totalorder %s701_s20, %s701_s20 }
   0x8   :  { %p708_p3 = por %p707_p2, %p706_p1 }
   0xa   :  { %p709_p4 = pnand %p708_p3, %p702_p0 }
   0xc   :  { %712 = shalt.err (!%p709_p4)
}
   0xd   :  { %s802_s21 = smov 64   ;;  %s803_s22 = smov 4  }
   0xe   :  { %36 = dma.hbm_to_vmem [thread:$0]  %s927_s1, 2048, %s31_s19, [#allocation6], %s802_s21, %s802_s21, %s803_s22  }
   0xf   :  { %s804_s25 = smov [#allocation2]   ;;  %s805_s27 = smov [#allocation7]  }
  0x10   :  { %s21_s26 = sshll.u32 %s804_s25, 4  ;;  %s42_s28 = sshll.u32 %s805_s27, 4  ;;  %s22_s26 = int_to_ptr.vmem [resolvable:$true] %s21_s26  ;;  %s43_s28 = int_to_ptr.vmem [resolvable:$true] %s42_s28 }
  0x11   :  { %s721_s29 = scalar_lea.vmem %s22_s26, 128  ;;  %p726_p6 = scmp.lt.s32.totalorder %s22_s26, %s22_s26 }
  0x12   :  { %p722_p5 = scmp.ne.s32.totalorder %s22_s26, %s721_s29  ;;  %p727_p7 = scmp.lt.s32.totalorder %s721_s29, %s721_s29 }
  0x14   :  { %p728_p8 = por %p727_p7, %p726_p6 }
  0x16   :  { %p729_p9 = pnand %p728_p8, %p722_p5 }
  0x18   :  { %732 = shalt.err (!%p729_p9)
}
  0x19   :  { %24 = dma.hbm_to_vmem [thread:$0]  %s926_s0, 128, %s22_s26, [#allocation3]  }
  0x1a   :  { %s741_s7 = scalar_lea.vmem %s43_s28, 1024  ;;  %p746_p11 = scmp.lt.s32.totalorder %s43_s28, %s43_s28 }
  0x1b   :  { %p742_p10 = scmp.ne.s32.totalorder %s43_s28, %s741_s7  ;;  %p747_p12 = scmp.lt.s32.totalorder %s741_s7, %s741_s7 }
  0x1d   :  { %p748_p13 = por %p747_p12, %p746_p11 }
  0x1f   :  { %p749_p0 = pnand %p748_p13, %p742_p10 }
  0x21   :  { %752 = shalt.err (!%p749_p0)
}
  0x22   :  { %48 = dma.hbm_to_vmem [thread:$0]  %s928_s2, 1024, %s43_s28, [#allocation6], %s802_s21, %s802_s21, %s803_s22  }
  0x23   :  { %793 = dma.done.wait [#allocation3], 128  }
  0x24   :  { %794 = vsyncadd [#allocation3], 4294967168 }
  0x25   :  { %795 = dma.done.wait [#allocation6], 3072  }
  0x26   :  { %796 = vsyncadd [#allocation6], 4294964224  ;;  %v62_v0 = vlaneseq  ;;  %vm67_vm4 = vcmask 64512   ;;  %v61_v2 = vld [vmem:[#allocation2] sm:$0xff]  ;;  %v806_v40 = vmov 0.0   ;;  %v669_v52 = vld [vmem:[#allocation5 + $0x70] sm:$0xff]  }
  0x27   :  { %638 = vmatprep.subr.bf16.mxu1 %v806_v40  ;;  %v667_v46 = vld [vmem:[#allocation5 + $0x78] sm:$0xff]   ;;  %v670_v53 = vld [vmem:[#allocation5 + $0x30] sm:$0xff]   ;;  %v671_v56 = vld [vmem:[#allocation5 + $0x68] sm:$0xff]   ;;  %s808_s0 = smov [#allocation8]  }
  0x28   :  { %v849_v1 = vand.u32 127, %v62_v0  ;;  %v668_v47 = vld [vmem:[#allocation5 + $0x38] sm:$0xff]   ;;  %607 = vmatprep.subr.bf16.mxu0 %v667_v46  ;;  %v672_v57 = vld [vmem:[#allocation5 + $0x28] sm:$0xff]   ;;  %v673_v58 = vld [vmem:[#allocation5 + $0x60] sm:$0xff]   ;;  %s542_s2 = sshll.u32 %s808_s0, 4  ;;  %s543_s2 = int_to_ptr.vmem [resolvable:$true] %s542_s2 }
  0x29   :  { %608 = vmatpush3.bf16.msra.mxu0 %v668_v47  ;;  %v674_v59 = vld [vmem:[#allocation5 + $0x20] sm:$0xff]   ;;  %v675_v60 = vld [vmem:[#allocation5 + $0x58] sm:$0xff]   ;;  %v677_v62 = vld [vmem:[#allocation5 + $0x50] sm:$0xff]   ;;  %s753_s9 = scalar_lea.vmem %s543_s2, 128  ;;  %p758_p2 = scmp.lt.s32.totalorder %s543_s2, %s543_s2 }
  0x2a   :  { %vm65_vm0 = vcmp.eq.s32.totalorder %v849_v1, 0  ;;  %vm89_vm1 = vcmp.eq.s32.totalorder %v849_v1, 1  ;;  %vm112_vm2 = vcmp.eq.s32.totalorder %v849_v1, 2  ;;  %vm135_vm3 = vcmp.eq.s32.totalorder %v849_v1, 3  ;;  %609 = vmatprep.subr.bf16.mxu0 %v669_v52  ;;  %v676_v61 = vld [vmem:[#allocation5 + $0x18] sm:$0xff]   ;;  %v678_v63 = vld [vmem:[#allocation5 + $0x10] sm:$0xff]   ;;  %p754_p1 = scmp.ne.s32.totalorder %s543_s2, %s753_s9  ;;  %p759_p3 = scmp.lt.s32.totalorder %s753_s9, %s753_s9 }
  0x2b   :  { %vm158_vm5 = vcmp.eq.s32.totalorder %v849_v1, 4  ;;  %vm181_vm6 = vcmp.eq.s32.totalorder %v849_v1, 5  ;;  %v66_v3 = vsel %vm65_vm0, %v61_v2, 0  ;;  %v90_v4 = vsel %vm89_vm1, %v61_v2, 0  ;;  %v679_v0 = vld [vmem:[#allocation5 + $0x48] sm:$0xff]  }
  0x2c   :  { %v113_v5 = vsel %vm112_vm2, %v61_v2, 0  ;;  %v136_v6 = vsel %vm135_vm3, %v61_v2, 0  ;;  %v68_v7 = vsel %vm67_vm4, %v66_v3, 0  ;;  %v91_v8 = vsel %vm67_vm4, %v90_v4, 0  ;;  %v681_v3 = vld [vmem:[#allocation5 + $0x40] sm:$0xff]   ;;  %p760_p4 = por %p759_p3, %p758_p2 }
  0x2d   :  { %v114_v9 = vsel %vm67_vm4, %v113_v5, 0  ;;  %vm204_vm7 = vcmp.eq.s32.totalorder %v849_v1, 6  ;;  %v70_v10 = vshrl.u32 %v68_v7, 16  ;;  %v69_v11 = vand.u32 65535, %v68_v7  ;;  %610 = vmatpush3.bf16.msra.mxu0 %v670_v53  ;;  %v682_v4 = vld [vmem:[#allocation5] sm:$0xff]   ;;  %v683_v5 = vld [vmem:[#allocation7 + $0x38] sm:$0xff]  }
  0x2e   :  { %v93_v12 = vshrl.u32 %v91_v8, 16  ;;  %v92_v13 = vand.u32 65535, %v91_v8  ;;  %v116_v14 = vshrl.u32 %v114_v9, 16  ;;  %v115_v15 = vand.u32 65535, %v114_v9  ;;  %611 = vmatprep.subr.bf16.mxu0 %v671_v56  ;;  %639 = vmatpush3.bf16.msra.mxu1 %v683_v5  ;;  %v685_v7 = vld [vmem:[#allocation7 + $0x28] sm:$0xff]   ;;  %v686_v8 = vld [vmem:[#allocation7 + $0x20] sm:$0xff]   ;;  %p761_p5 = pnand %p760_p4, %p754_p1 }
  0x2f   :  { %v137_v16 = vsel %vm67_vm4, %v136_v6, 0  ;;  %vm227_vm8 = vcmp.eq.s32.totalorder %v849_v1, 7  ;;  %v72_v17 = vcvt.s32.f32 %v70_v10  ;;  %v71_v18 = vcvt.s32.f32 %v69_v11  ;;  %v684_v6 = vld [vmem:[#allocation7 + $0x30] sm:$0xff]   ;;  %640 = vmatprep.subr.bf16.mxu1 %v806_v40  ;;  %v687_v9 = vld [vmem:[#allocation7 + $0x18] sm:$0xff]  }
  0x30   :  { %v95_v19 = vcvt.s32.f32 %v93_v12  ;;  %v94_v20 = vcvt.s32.f32 %v92_v13  ;;  %v159_v21 = vsel %vm158_vm5, %v61_v2, 0  ;;  %v182_v22 = vsel %vm181_vm6, %v61_v2, 0  ;;  %v688_v10 = vld [vmem:[#allocation7 + $0x10] sm:$0xff]  }
  0x31   :  { %75 = vadd.xlane.f32.xlu0 %v72_v17  ;;  %73 = vadd.xlane.f32.xlu1 %v71_v18  ;;  %v205_v23 = vsel %vm204_vm7, %v61_v2, 0  ;;  %v160_v24 = vsel %vm67_vm4, %v159_v21, 0  ;;  %v183_v25 = vsel %vm67_vm4, %v182_v22, 0  ;;  %v139_v26 = vshrl.u32 %v137_v16, 16 }
  0x32   :  { %v138_v27 = vand.u32 65535, %v137_v16  ;;  %v228_v28 = vsel %vm227_vm8, %v61_v2, 0  ;;  %v162_v29 = vshrl.u32 %v160_v24, 16  ;;  %v161_v30 = vand.u32 65535, %v160_v24  ;;  %612 = vmatpush3.bf16.msra.mxu0 %v672_v57  ;;  %v680_v2 = vld [vmem:[#allocation5 + $0x8] sm:$0xff]   ;;  %641 = vmatpush3.bf16.msra.mxu1 %v684_v6 }
  0x33   :  { %v185_v31 = vshrl.u32 %v183_v25, 16  ;;  %v206_v32 = vsel %vm67_vm4, %v205_v23, 0  ;;  %v118_v33 = vcvt.s32.f32 %v116_v14  ;;  %v117_v34 = vcvt.s32.f32 %v115_v15  ;;  %613 = vmatprep.subr.bf16.mxu0 %v673_v58  ;;  %642 = vmatprep.subr.bf16.mxu1 %v806_v40 }
  0x34   :  { %v141_v35 = vcvt.s32.f32 %v139_v26  ;;  %v140_v36 = vcvt.s32.f32 %v138_v27  ;;  %v164_v37 = vcvt.s32.f32 %v162_v29  ;;  %v163_v38 = vcvt.s32.f32 %v161_v30 }
  0x35   :  { %98 = vadd.xlane.f32.xlu0 %v95_v19  ;;  %96 = vadd.xlane.f32.xlu1 %v94_v20  ;;  %v184_v39 = vand.u32 65535, %v183_v25  ;;  %v187_v41 = vcvt.s32.f32 %v185_v31  ;;  %v208_v43 = vshrl.u32 %v206_v32, 16  ;;  %v207_v44 = vand.u32 65535, %v206_v32 }
  0x36   :  { %v229_v45 = vsel %vm67_vm4, %v228_v28, 0  ;;  %614 = vmatpush3.bf16.msra.mxu0 %v674_v59  ;;  %643 = vmatpush3.bf16.msra.mxu1 %v685_v7  ;;  %v881_v31 = vadd.s32 128, %v849_v1 }
  0x37   :  { %v186_v42 = vcvt.s32.f32 %v184_v39  ;;  %v210_v48 = vcvt.s32.f32 %v208_v43  ;;  %v209_v49 = vcvt.s32.f32 %v207_v44  ;;  %v231_v50 = vshrl.u32 %v229_v45, 16  ;;  %615 = vmatprep.subr.bf16.mxu0 %v675_v60  ;;  %644 = vmatprep.subr.bf16.mxu1 %v806_v40 }
  0x38   :  { %v230_v51 = vand.u32 65535, %v229_v45 }
  0x39   :  { %121 = vadd.xlane.f32.xlu0 %v118_v33  ;;  %119 = vadd.xlane.f32.xlu1 %v117_v34  ;;  %v233_v54 = vcvt.s32.f32 %v231_v50 }
  0x3a   :  { %v232_v55 = vcvt.s32.f32 %v230_v51  ;;  %616 = vmatpush3.bf16.msra.mxu0 %v676_v61  ;;  %645 = vmatpush3.bf16.msra.mxu1 %v686_v8 }
  0x3b   :  { %617 = vmatprep.subr.bf16.mxu0 %v677_v62  ;;  %646 = vmatprep.subr.bf16.mxu1 %v806_v40 }
  0x3d   :  { %144 = vadd.xlane.f32.xlu0 %v141_v35  ;;  %142 = vadd.xlane.f32.xlu1 %v140_v36 }
  0x3e   :  { %618 = vmatpush3.bf16.msra.mxu0 %v678_v63  ;;  %647 = vmatpush3.bf16.msra.mxu1 %v687_v9 }
  0x3f   :  { %619 = vmatprep.subr.bf16.mxu0 %v679_v0  ;;  %648 = vmatprep.subr.bf16.mxu1 %v806_v40 }
  0x41   :  { %167 = vadd.xlane.f32.xlu0 %v164_v37  ;;  %165 = vadd.xlane.f32.xlu1 %v163_v38 }
  0x42   :  { %620 = vmatpush3.bf16.msra.mxu0 %v680_v2  ;;  %649 = vmatpush3.bf16.msra.mxu1 %v688_v10 }
  0x43   :  { %621 = vmatprep.subr.bf16.mxu0 %v681_v3  ;;  %650 = vmatprep.subr.bf16.mxu1 %v806_v40 }
  0x45   :  { %190 = vadd.xlane.f32.xlu0 %v187_v41  ;;  %188 = vadd.xlane.f32.xlu1 %v186_v42 }
  0x46   :  { %622 = vmatpush3.bf16.msra.mxu0 %v682_v4 }
  0x49   :  { %213 = vadd.xlane.f32.xlu0 %v210_v48  ;;  %211 = vadd.xlane.f32.xlu1 %v209_v49 }
  0x4d   :  { %236 = vadd.xlane.f32.xlu0 %v233_v54  ;;  %234 = vadd.xlane.f32.xlu1 %v232_v55 }
  0xba   :  { %v76_v11 = vpop.xlane.xlu0 %75  ;;  %v74_v12 = vpop.xlane.xlu1 %73 }
  0xbb   :  { %v78_v16 = vcvt.f32.s32 %v76_v11  ;;  %v77_v23 = vcvt.f32.s32 %v74_v12 }
  0xbd   :  { %v79_v22 = vshll.u32 %v78_v16, 16 }
  0xbe   :  { %v99_v13 = vpop.xlane.xlu0 %98  ;;  %v97_v14 = vpop.xlane.xlu1 %96 }
  0xbf   :  { %v101_v15 = vcvt.f32.s32 %v99_v13  ;;  %v100_v20 = vcvt.f32.s32 %v97_v14  ;;  %v80_v32 = vadd.s32 %v79_v22, %v77_v23 }
  0xc1   :  { %v102_v19 = vshll.u32 %v101_v15, 16  ;;  %vm81_vm11 = vcmp.eq.s32.totalorder %v80_v32, %v849_v1  ;;  %vm82_vm12 = vcmp.eq.s32.totalorder %v80_v32, %v881_v31  ;;  %v690_v32 = vld [vmem:[#allocation7] sm:$0xff]  }
  0xc2   :  { %v122_v17 = vpop.xlane.xlu0 %121  ;;  %v120_v18 = vpop.xlane.xlu1 %119  ;;  %v566_v48 = vsel %vm81_vm11, 1.0, %v806_v40  ;;  %v567_v49 = vsel %vm82_vm12, 1.0, %v806_v40 }
  0xc3   :  { %v124_v21 = vcvt.f32.s32 %v122_v17  ;;  %v123_v25 = vcvt.f32.s32 %v120_v18  ;;  %v103_v28 = vadd.s32 %v102_v19, %v100_v20 }
  0xc5   :  { %v125_v24 = vshll.u32 %v124_v21, 16  ;;  %vm104_vm9 = vcmp.eq.s32.totalorder %v103_v28, %v849_v1  ;;  %vm105_vm10 = vcmp.eq.s32.totalorder %v103_v28, %v881_v31 }
  0xc6   :  { %v145_v26 = vpop.xlane.xlu0 %144  ;;  %v143_v27 = vpop.xlane.xlu1 %142  ;;  %v568_v42 = vsel %vm104_vm9, 1.0, %v806_v40  ;;  %v569_v45 = vsel %vm105_vm10, 1.0, %v806_v40  ;;  %vm807_vm9 = vmmov 0  }
  0xc7   :  { %v147_v29 = vcvt.f32.s32 %v145_v26  ;;  %v146_v30 = vcvt.f32.s32 %v143_v27  ;;  %v126_v34 = vadd.s32 %v125_v24, %v123_v25  ;;  %v110_v54 = vadd.f32 %v568_v42, %v566_v48  ;;  %654 = vmatprep.mubr.msk.bf16.mxu1 %vm807_vm9, %v806_v40 }
  0xc8   :  { %v111_v55 = vadd.f32 %v569_v45, %v567_v49 }
  0xc9   :  { %v148_v33 = vshll.u32 %v147_v29, 16  ;;  %vm127_vm13 = vcmp.eq.s32.totalorder %v126_v34, %v849_v1  ;;  %vm128_vm14 = vcmp.eq.s32.totalorder %v126_v34, %v881_v31 }
  0xca   :  { %v168_v35 = vpop.xlane.xlu0 %167  ;;  %v166_v36 = vpop.xlane.xlu1 %165  ;;  %v570_v51 = vsel %vm127_vm13, 1.0, %v806_v40  ;;  %v571_v52 = vsel %vm128_vm14, 1.0, %v806_v40 }
  0xcb   :  { %v149_v37 = vadd.s32 %v148_v33, %v146_v30  ;;  %v170_v38 = vcvt.f32.s32 %v168_v35  ;;  %v169_v39 = vcvt.f32.s32 %v166_v36  ;;  %v133_v62 = vadd.f32 %v570_v51, %v110_v54  ;;  %v689_v30 = vld [vmem:[#allocation7 + $0x8] sm:$0xff]  }
  0xcc   :  { %v134_v63 = vadd.f32 %v571_v52, %v111_v55  ;;  %651 = vmatpush3.bf16.msra.mxu1 %v689_v30 }
  0xcd   :  { %v171_v41 = vshll.u32 %v170_v38, 16  ;;  %vm150_vm15 = vcmp.eq.s32.totalorder %v149_v37, %v849_v1  ;;  %vm151_vm0 = vcmp.eq.s32.totalorder %v149_v37, %v881_v31  ;;  %652 = vmatprep.subr.bf16.mxu1 %v806_v40 }
  0xce   :  { %v191_v43 = vpop.xlane.xlu0 %190  ;;  %v189_v44 = vpop.xlane.xlu1 %188  ;;  %v572_v56 = vsel %vm150_vm15, 1.0, %v806_v40  ;;  %v573_v0 = vsel %vm151_vm0, 1.0, %v806_v40 }
  0xcf   :  { %v172_v46 = vadd.s32 %v171_v41, %v169_v39  ;;  %v193_v47 = vcvt.f32.s32 %v191_v43  ;;  %v192_v50 = vcvt.f32.s32 %v189_v44  ;;  %v156_v4 = vadd.f32 %v572_v56, %v133_v62 }
  0xd0   :  { %v157_v8 = vadd.f32 %v573_v0, %v134_v63  ;;  %653 = vmatpush3.bf16.msra.mxu1 %v690_v32 }
  0xd1   :  { %v194_v53 = vshll.u32 %v193_v47, 16  ;;  %vm173_vm1 = vcmp.eq.s32.totalorder %v172_v46, %v849_v1  ;;  %vm174_vm2 = vcmp.eq.s32.totalorder %v172_v46, %v881_v31 }
  0xd2   :  { %v214_v57 = vpop.xlane.xlu0 %213  ;;  %v212_v58 = vpop.xlane.xlu1 %211  ;;  %v574_v2 = vsel %vm173_vm1, 1.0, %v806_v40  ;;  %v575_v5 = vsel %vm174_vm2, 1.0, %v806_v40 }
  0xd3   :  { %v195_v59 = vadd.s32 %v194_v53, %v192_v50  ;;  %v216_v60 = vcvt.f32.s32 %v214_v57  ;;  %v215_v61 = vcvt.f32.s32 %v212_v58  ;;  %v179_v12 = vadd.f32 %v574_v2, %v156_v4 }
  0xd4   :  { %v180_v16 = vadd.f32 %v575_v5, %v157_v8 }
  0xd5   :  { %vm196_vm3 = vcmp.eq.s32.totalorder %v195_v59, %v849_v1  ;;  %vm197_vm4 = vcmp.eq.s32.totalorder %v195_v59, %v881_v31  ;;  %v217_v3 = vshll.u32 %v216_v60, 16 }
  0xd6   :  { %v237_v6 = vpop.xlane.xlu0 %236  ;;  %v235_v7 = vpop.xlane.xlu1 %234  ;;  %v576_v13 = vsel %vm196_vm3, 1.0, %v806_v40  ;;  %v577_v14 = vsel %vm197_vm4, 1.0, %v806_v40 }
  0xd7   :  { %v218_v9 = vadd.s32 %v217_v3, %v215_v61  ;;  %v239_v10 = vcvt.f32.s32 %v237_v6  ;;  %v238_v11 = vcvt.f32.s32 %v235_v7  ;;  %v202_v19 = vadd.f32 %v576_v13, %v179_v12 }
  0xd8   :  { %v203_v21 = vadd.f32 %v577_v14, %v180_v16 }
  0xd9   :  { %vm219_vm5 = vcmp.eq.s32.totalorder %v218_v9, %v849_v1  ;;  %v240_v15 = vshll.u32 %v239_v10, 16  ;;  %vm220_vm6 = vcmp.eq.s32.totalorder %v218_v9, %v881_v31 }
  0xda   :  { %v578_v17 = vsel %vm219_vm5, 1.0, %v806_v40  ;;  %v579_v18 = vsel %vm220_vm6, 1.0, %v806_v40 }
  0xdb   :  { %v241_v20 = vadd.s32 %v240_v15, %v238_v11  ;;  %v226_v22 = vadd.f32 %v579_v18, %v203_v21  ;;  %v225_v23 = vadd.f32 %v578_v17, %v202_v19 }
  0xdd   :  { %vm242_vm7 = vcmp.eq.s32.totalorder %v241_v20, %v849_v1  ;;  %vm243_vm8 = vcmp.eq.s32.totalorder %v241_v20, %v881_v31 }
  0xde   :  { %v580_v24 = vsel %vm242_vm7, 1.0, %v806_v40  ;;  %v581_v25 = vsel %vm243_vm8, 1.0, %v806_v40 }
  0xdf   :  { %v249_v26 = vadd.f32 %v581_v25, %v226_v22  ;;  %v248_v27 = vadd.f32 %v580_v24, %v225_v23 }
  0xe1   :  { %v251_v28 = vpack.c.bf16 %v249_v26, %v249_v26  ;;  %v250_v29 = vpack.c.bf16 %v248_v27, %v248_v27 }
  0xe3   :  { %412 = vmatprep.mubr.bf16.mxu0 %v251_v28 }
  0xe4   :  { %413 = vmatmul.mubr.bf16.vlgmr.msra.gmra.mxu0 %v250_v29 }
 0x1a4   :  { %v623_v1 = vpop.f32.mrf.mxu0 }
 0x1a6   :  { %v624_v31 = vpop.f32.mrf.mxu0 }
 0x1a7   :  { %v625_v33 = vadd.f32 %v624_v31, %v623_v1 }
 0x1a8   :  { %v626_v34 = vpop.f32.mrf.mxu0 }
 0x1a9   :  { %v420_v35 = vmul.f32 0.125, %v625_v33 }
 0x1aa   :  { %v627_v36 = vpop.f32.mrf.mxu0 }
 0x1ab   :  { %v422_v37 = vpack.c.bf16 %v420_v35, %v420_v35  ;;  %421 = vst [vmem:[#allocation8] sm:$0xff] %v420_v35 }
 0x1ad   :  { %655 = vmatmul.mubr.bf16.vlgmr.msra.gmra.mxu1 %v422_v37 }
 0x1ae   :  { %764 = shalt.err (!%p761_p5)
}
 0x1af   :  { %545 = dma.vmem_to_hbm [thread:$0]  %s543_s2, 128, %s930_s4, [#allocation4]   ;;  %v598_v40 = vld [vmem:[%s929_s3] ss:$0 sm:$0xff] }
 0x1b0   :  { %s809_s14 = smov [#allocation9]  }
 0x1b1   :  { %s552_s15 = sshll.u32 %s809_s14, 4  ;;  %s553_s15 = int_to_ptr.vmem [resolvable:$true] %s552_s15 }
 0x1b2   :  { %s773_s16 = scalar_lea.vmem %s553_s15, 128  ;;  %p778_p7 = scmp.lt.s32.totalorder %s553_s15, %s553_s15 }
 0x1b3   :  { %p774_p6 = scmp.ne.s32.totalorder %s553_s15, %s773_s16  ;;  %p779_p8 = scmp.lt.s32.totalorder %s773_s16, %s773_s16 }
 0x1b5   :  { %p780_p9 = por %p779_p8, %p778_p7 }
 0x1b7   :  { %p781_p10 = pnand %p780_p9, %p774_p6 }
 0x26d   :  { %v528_v38 = vpop.f32.mrf.mxu1 }
 0x26e   :  { %v529_v39 = vadd.f32 %v598_v40, %v528_v38 }
 0x26f   :  { %v656_v41 = vpop.f32.mrf.mxu1 }
 0x270   :  { %691 = vtanh.f32 %v529_v39 }
 0x271   :  { %v531_v42 = vpop.f32.mrf.mxu1 }
 0x273   :  { %v657_v43 = vpop.f32.mrf.mxu1 }
 0x27d   :  { %v692_v44 = vpop.eup %691 }
 0x27e   :  { %535 = vst [vmem:[#allocation9] sm:$0xff] %v692_v44 }
 0x27f   :  { %784 = shalt.err (!%p781_p10)
}
 0x280   :  { %555 = dma.vmem_to_hbm [thread:$0]  %s553_s15, 128, %s931_s5, [#allocation10]  }
 0x281   :  { %797 = dma.done.wait [#allocation4], 128  }
 0x282   :  { %798 = vsyncadd [#allocation4], 4294967168 }
 0x283   :  { %799 = dma.done.wait [#allocation10], 128  }
 0x284   :  { %800 = vsyncadd [#allocation10], 4294967168 }
 0x285   :  { %562 = vsyncpa [#allocation3], 1 }
 0x286   :  { %563 = vsyncpa [#allocation6], 1 }
 0x287   :  { %564 = vsyncpa [#allocation4], 1 }
 0x288   :  { %565 = vsyncpa [#allocation10], 1 }

</bundles_post_ra>
